<compile_context>
chip_gen: v7x
topology: tpu7x:2x2x1
jax: 0.10.0
libtpu: 0.0.40
codegen_flags: <defaults>
</compile_context>

<pallas_src>
import functools

import jax
import jax.numpy as jnp
import numpy as np
from jax import lax
from jax.experimental import pallas as pl
from jax.experimental.pallas import tpu as pltpu


_NEG_INF = -1e30  # big-but-finite running-max init (avoids inf-inf NaNs)


def _attention_kernel(x_ref, ctx_ref, wq_ref, wk_ref, wv_ref, wo_ref, bo_ref,
                      o_ref, m_ref, l_ref, acc_ref,
                      *, heads, dim_head, scale):
    """Fused flash attention.  Grid = (batch, q-tile, kv-tile); kv innermost.

    x_ref   : (1, tq, Dq)      query-input tile
    ctx_ref : (1, tk, Dc)      context tile
    wq_ref  : (Dq, H*Dh)       to_q weight, pre-transposed to (in, out)
    wk_ref  : (Dc, H*Dh)       to_kv[:inner] weight, pre-transposed
    wv_ref  : (Dc, H*Dh)       to_kv[inner:] weight, pre-transposed
    wo_ref  : (H*Dh, Dq)       to_out weight, pre-transposed
    bo_ref  : (1, Dq)          to_out bias
    o_ref   : (1, tq, Dq)      output tile (resident across the kv axis)
    m_ref   : (H, tq, 1)  f32  running max          (scratch)
    l_ref   : (H, tq, 1)  f32  running denominator  (scratch)
    acc_ref : (H, tq, Dh) f32  running numerator    (scratch)
    """
    kv = pl.program_id(2)
    n_kv = pl.num_programs(2)

    @pl.when(kv == 0)
    def _init():
        m_ref[...] = jnp.full(m_ref.shape, _NEG_INF, dtype=m_ref.dtype)
        l_ref[...] = jnp.zeros(l_ref.shape, dtype=l_ref.dtype)
        acc_ref[...] = jnp.zeros(acc_ref.shape, dtype=acc_ref.dtype)

    x = x_ref[0]                      # (tq, Dq)
    c = ctx_ref[0]                    # (tk, Dc)
    mxu_dtype = x.dtype               # bf16 inputs keep the fast MXU path; f32 is a no-op

    # Projections: weights are already (in, out) -> no in-kernel transpose.
    # Scale folded into q (a (tq, inner) multiply instead of (H, tq, tk)).
    q = (jnp.dot(x, wq_ref[...].astype(mxu_dtype),
                 preferred_element_type=jnp.float32) * scale).astype(mxu_dtype)
    k = jnp.dot(c, wk_ref[...].astype(mxu_dtype),
                preferred_element_type=jnp.float32).astype(mxu_dtype)
    v = jnp.dot(c, wv_ref[...].astype(mxu_dtype),
                preferred_element_type=jnp.float32).astype(mxu_dtype)

    # Online-softmax accumulation, one head at a time (static lane slices,
    # no head split/merge transposes).
    for h in range(heads):
        sl = slice(h * dim_head, (h + 1) * dim_head)
        qh, kh, vh = q[:, sl], k[:, sl], v[:, sl]            # (tq, Dh) / (tk, Dh)

        s = lax.dot_general(qh, kh, (((1,), (1,)), ((), ())),
                            preferred_element_type=jnp.float32)   # (tq, tk)

        m_prev = m_ref[h]                                    # (tq, 1)
        m_new = jnp.maximum(m_prev, jnp.max(s, axis=-1, keepdims=True))
        alpha = jnp.exp(m_prev - m_new)                      # (tq, 1)
        p = jnp.exp(s - m_new)                               # (tq, tk)

        l_ref[h] = alpha * l_ref[h] + jnp.sum(p, axis=-1, keepdims=True)
        acc_ref[h] = alpha * acc_ref[h] + jnp.dot(
            p.astype(mxu_dtype), vh, preferred_element_type=jnp.float32)
        m_ref[h] = m_new

    # TODO(synk): mask / dropout(p>0) not implemented; module defaults
    # (mask=None, dropout p=0.0) are exact.

    @pl.when(kv == n_kv - 1)
    def _finalize():
        wo = wo_ref[...].astype(mxu_dtype)                   # (inner, Dq)
        y = None
        for h in range(heads):
            inv_l = pl.reciprocal(l_ref[h], approx=True)     # EUP, (tq, 1)
            out_h = (acc_ref[h] * inv_l).astype(mxu_dtype)   # (tq, Dh)
            w_h = wo[h * dim_head:(h + 1) * dim_head, :]     # (Dh, Dq)
            contrib = jnp.dot(out_h, w_h, preferred_element_type=jnp.float32)
            y = contrib if y is None else y + contrib
        # TODO(synk): Dq < 128 means masked (non lane-dense) output stores; use
        # Dq that is a multiple of 128 in production shapes for full store BW.
        o_ref[0] = (y + bo_ref[...]).astype(o_ref.dtype)


def _pick_tile(n, cap):
    """Largest legal tile <= cap: multiple of 8 (sublane rule) that divides n
    exactly (so no padded kv columns leak into the softmax), else full dim."""
    if n <= cap:
        return n
    for t in range(cap, 7, -1):
        if n % t == 0 and t % 8 == 0:
            return t
    return n


def attention_forward(x, context, wq, wkv, wo, bo, *, heads, dim_head,
                      q_tile=None, kv_tile=None):
    """Pallas flash-attention forward matching Attention.forward
    (mask=None, dropout p=0).  x: (B, N, Dq), context: (B, M, Dc) or None."""
    if context is None:
        context = x
    B, N, Dq = x.shape
    Bc, M, Dc = context.shape
    assert Bc == B
    inner = heads * dim_head
    scale = float(dim_head) ** -0.5

    # One-time layout prep outside the hot loop:
    #   * split the fused kv weight  -> no non-lane-aligned slicing in-kernel
    #   * pre-transpose all weights to (in, out) -> no per-step XLU transposes
    wq_t = jnp.transpose(wq)             # (Dq, inner)
    wk_t = jnp.transpose(wkv[:inner])    # (Dc, inner)
    wv_t = jnp.transpose(wkv[inner:])    # (Dc, inner)
    wo_t = jnp.transpose(wo)             # (inner, Dq)
    bo2 = bo.reshape(1, Dq)

    tq = q_tile if q_tile is not None else _pick_tile(N, 128)
    tk = kv_tile if kv_tile is not None else _pick_tile(M, 128)
    assert N % tq == 0 and M % tk == 0, "tiles must divide the sequence lengths"

    grid = (B, N // tq, M // tk)

    # Conservative VMEM budget (block inputs/outputs are double-buffered).
    itemsize = jnp.dtype(x.dtype).itemsize
    est = (
        2 * 2 * (tq * max(Dq, 128) + tk * max(Dc, 128)) * itemsize      # x / ctx tiles
        + 2 * 2 * tq * max(Dq, 128) * itemsize                          # output tile
        + 2 * 4 * (Dq * inner + 2 * Dc * inner + inner * Dq + 128)      # weights + bias
        + 4 * heads * tq * (2 * 128 + max(dim_head, 128))               # m/l/acc scratch
        + (4 << 20)                                                     # headroom
    )
    vmem_limit = int(min(max(est, 32 << 20), 48 << 20))   # safely under v7x's 64 MiB

    kernel = functools.partial(_attention_kernel, heads=heads,
                               dim_head=dim_head, scale=scale)

    return pl.pallas_call(
        kernel,
        out_shape=jax.ShapeDtypeStruct((B, N, Dq), x.dtype),
        grid_spec=pltpu.PrefetchScalarGridSpec(
            num_scalar_prefetch=0,
            grid=grid,
            in_specs=[
                pl.BlockSpec((1, tq, Dq), lambda b, qi, kv: (b, qi, 0)),   # x
                pl.BlockSpec((1, tk, Dc), lambda b, qi, kv: (b, kv, 0)),   # context
                pl.BlockSpec((Dq, inner), lambda b, qi, kv: (0, 0)),       # Wq^T
                pl.BlockSpec((Dc, inner), lambda b, qi, kv: (0, 0)),       # Wk^T
                pl.BlockSpec((Dc, inner), lambda b, qi, kv: (0, 0)),       # Wv^T
                pl.BlockSpec((inner, Dq), lambda b, qi, kv: (0, 0)),       # Wo^T
                pl.BlockSpec((1, Dq), lambda b, qi, kv: (0, 0)),           # bo
            ],
            out_specs=pl.BlockSpec((1, tq, Dq), lambda b, qi, kv: (b, qi, 0)),
            scratch_shapes=[
                pltpu.VMEM((heads, tq, 1), jnp.float32),         # running max
                pltpu.VMEM((heads, tq, 1), jnp.float32),         # running denom
                pltpu.VMEM((heads, tq, dim_head), jnp.float32),  # running numerator
            ],
        ),
        compiler_params=pltpu.CompilerParams(
            dimension_semantics=("parallel", "parallel", "arbitrary"),
            vmem_limit_bytes=vmem_limit),
    )(x, context, wq_t, wk_t, wv_t, wo_t, bo2)


def attention_reference(x, context, wq, wkv, wo, bo, *, heads, dim_head):
    """Pure-JAX reference matching the PyTorch forward (mask=None, dropout p=0)."""
    if context is None:
        context = x
    B, N, Dq = x.shape
    inner = heads * dim_head
    scale = float(dim_head) ** -0.5
    q = x @ wq.T
    kv = context @ wkv.T
    k, v = kv[..., :inner], kv[..., inner:]

    def split(t):
        b, n, _ = t.shape
        return t.reshape(b, n, heads, dim_head).transpose(0, 2, 1, 3)

    qh, kh, vh = split(q), split(k), split(v)
    sim = jnp.einsum('bhid,bhjd->bhij', qh, kh) * scale
    attn = jax.nn.softmax(sim, axis=-1)
    out = jnp.einsum('bhij,bhjd->bhid', attn, vh)
    out = out.transpose(0, 2, 1, 3).reshape(B, N, inner)
    return out @ wo.T + bo


if __name__ == "__main__":
    key = jax.random.PRNGKey(0)

    def make_case(k, B, N, M, Dq, Dc, heads, dim_head):
        kx, kc, kq, kkv, kwo, kbo = jax.random.split(k, 6)
        inner = heads * dim_head
        x = jax.random.normal(kx, (B, N, Dq), dtype=jnp.float32)
        ctx = jax.random.normal(kc, (B, M, Dc), dtype=jnp.float32)
        wq = jax.random.normal(kq, (inner, Dq), dtype=jnp.float32) * 0.05
        wkv = jax.random.normal(kkv, (2 * inner, Dc), dtype=jnp.float32) * 0.05
        wo = jax.random.normal(kwo, (Dq, inner), dtype=jnp.float32) * 0.05
        bo = jax.random.normal(kbo, (Dq,), dtype=jnp.float32) * 0.05
        return x, ctx, wq, wkv, wo, bo

    k1, k2 = jax.random.split(key)

    # Case 1: self-attention (context=None path), tiles forced small so the
    # online softmax really runs across multiple kv grid steps (grid = (2,2,2)).
    heads, dim_head = 2, 16
    x, _, wq, wkv, wo, bo = make_case(k1, 2, 16, 16, 32, 32, heads, dim_head)
    out = attention_forward(x, None, wq, wkv, wo, bo,
                            heads=heads, dim_head=dim_head, q_tile=8, kv_tile=8)
    out = jax.block_until_ready(out)
    ref = attention_reference(x, None, wq, wkv, wo, bo,
                              heads=heads, dim_head=dim_head)
    np.testing.assert_allclose(np.asarray(out), np.asarray(ref),
                               rtol=1e-2, atol=1e-3)

    # Case 2: cross-attention with different context length/width, default tiles.
    heads, dim_head = 2, 16
    x, ctx, wq, wkv, wo, bo = make_case(k2, 2, 8, 24, 32, 48, heads, dim_head)
    out = attention_forward(x, ctx, wq, wkv, wo, bo,
                            heads=heads, dim_head=dim_head)
    out = jax.block_until_ready(out)
    ref = attention_reference(x, ctx, wq, wkv, wo, bo,
                              heads=heads, dim_head=dim_head)
    np.testing.assert_allclose(np.asarray(out), np.asarray(ref),
                               rtol=1e-2, atol=1e-3)

    print("KERNEL_OK")
</pallas_src>

<mosaic_0001>
module attributes {stable_mosaic.version = 11 : i64} {
  func.func @_attention_kernel(%arg0: i32, %arg1: i32, %arg2: i32, %arg3: memref<1x8x32xf32, #tpu.memory_space<vmem>>, %arg4: memref<1x8x32xf32, #tpu.memory_space<vmem>>, %arg5: memref<32x32xf32, #tpu.memory_space<vmem>>, %arg6: memref<32x32xf32, #tpu.memory_space<vmem>>, %arg7: memref<32x32xf32, #tpu.memory_space<vmem>>, %arg8: memref<32x32xf32, #tpu.memory_space<vmem>>, %arg9: memref<1x32xf32, #tpu.memory_space<vmem>>, %arg10: memref<1x8x32xf32, #tpu.memory_space<vmem>>, %arg11: memref<2x8x1xf32, #tpu.memory_space<vmem>>, %arg12: memref<2x8x1xf32, #tpu.memory_space<vmem>>, %arg13: memref<2x8x16xf32, #tpu.memory_space<vmem>>) attributes {dimension_semantics = [#tpu.dimension_semantics<parallel>, #tpu.dimension_semantics<parallel>, #tpu.dimension_semantics<arbitrary>], iteration_bounds = array<i64: 2, 2, 2>, scalar_prefetch = 0 : i64, scratch_operands = 3 : i64, tpu.core_type = #tpu.core_type<tc>, window_params = [{transform_indices = @transform_0, window_bounds = array<i64: 1, 8, 32>}, {transform_indices = @transform_1, window_bounds = array<i64: 1, 8, 32>}, {pipeline_mode = #tpu.pipeline_mode<synchronous>, transform_indices = @transform_2, window_bounds = array<i64: 32, 32>}, {pipeline_mode = #tpu.pipeline_mode<synchronous>, transform_indices = @transform_3, window_bounds = array<i64: 32, 32>}, {pipeline_mode = #tpu.pipeline_mode<synchronous>, transform_indices = @transform_4, window_bounds = array<i64: 32, 32>}, {pipeline_mode = #tpu.pipeline_mode<synchronous>, transform_indices = @transform_5, window_bounds = array<i64: 32, 32>}, {pipeline_mode = #tpu.pipeline_mode<synchronous>, transform_indices = @transform_6, window_bounds = array<i64: 1, 32>}, {transform_indices = @transform_7, window_bounds = array<i64: 1, 8, 32>}]} {
    %c0_i32 = arith.constant 0 : i32
    %0 = arith.cmpi eq, %arg2, %c0_i32 : i32
    %1 = arith.extui %0 : i1 to i32
    %c0_i32_0 = arith.constant 0 : i32
    %2 = arith.cmpi ne, %1, %c0_i32_0 : i32
    scf.if %2 {
      %cst_59 = arith.constant -1.000000e+30 : f32
      %88 = vector.broadcast %cst_59 : f32 to vector<2x8x1xf32>
      %c0_60 = arith.constant 0 : index
      %c0_61 = arith.constant 0 : index
      %c0_62 = arith.constant 0 : index
      %89 = vector.load %arg11[%c0_60, %c0_61, %c0_62] : memref<2x8x1xf32, #tpu.memory_space<vmem>>, vector<2x8x1xf32>
      tpu.vector_store %arg11[%c0_60, %c0_61, %c0_62], %88 {strides = array<i32>} : memref<2x8x1xf32, #tpu.memory_space<vmem>>, vector<2x8x1xf32>,
      %cst_63 = arith.constant 0.000000e+00 : f32
      %90 = vector.broadcast %cst_63 : f32 to vector<2x8x1xf32>
      %c0_64 = arith.constant 0 : index
      %c0_65 = arith.constant 0 : index
      %c0_66 = arith.constant 0 : index
      %91 = vector.load %arg12[%c0_64, %c0_65, %c0_66] : memref<2x8x1xf32, #tpu.memory_space<vmem>>, vector<2x8x1xf32>
      tpu.vector_store %arg12[%c0_64, %c0_65, %c0_66], %90 {strides = array<i32>} : memref<2x8x1xf32, #tpu.memory_space<vmem>>, vector<2x8x1xf32>,
      %cst_67 = arith.constant 0.000000e+00 : f32
      %92 = vector.broadcast %cst_67 : f32 to vector<2x8x16xf32>
      %c0_68 = arith.constant 0 : index
      %c0_69 = arith.constant 0 : index
      %c0_70 = arith.constant 0 : index
      %93 = vector.load %arg13[%c0_68, %c0_69, %c0_70] : memref<2x8x16xf32, #tpu.memory_space<vmem>>, vector<2x8x16xf32>
      tpu.vector_store %arg13[%c0_68, %c0_69, %c0_70], %92 {strides = array<i32>} : memref<2x8x16xf32, #tpu.memory_space<vmem>>, vector<2x8x16xf32>,
    } else {
    }
    %c0 = arith.constant 0 : index
    %c0_1 = arith.constant 0 : index
    %c0_2 = arith.constant 0 : index
    %3 = vector.load %arg3[%c0, %c0_1, %c0_2] : memref<1x8x32xf32, #tpu.memory_space<vmem>>, vector<1x8x32xf32>
    %4 = vector.shape_cast %3 : vector<1x8x32xf32> to vector<8x32xf32>
    %c0_3 = arith.constant 0 : index
    %c0_4 = arith.constant 0 : index
    %c0_5 = arith.constant 0 : index
    %5 = vector.load %arg4[%c0_3, %c0_4, %c0_5] : memref<1x8x32xf32, #tpu.memory_space<vmem>>, vector<1x8x32xf32>
    %6 = vector.shape_cast %5 : vector<1x8x32xf32> to vector<8x32xf32>
    %c0_6 = arith.constant 0 : index
    %c0_7 = arith.constant 0 : index
    %7 = vector.load %arg5[%c0_6, %c0_7] : memref<32x32xf32, #tpu.memory_space<vmem>>, vector<32x32xf32>
    %cst = arith.constant dense<0.000000e+00> : vector<8x32xf32>
    %8 = tpu.matmul %4, %7, %cst {dimension_numbers = #tpu.dot_dimension_numbers<[1], [0], [0], [1], [0, 0, 1, 1], [], []>} : vector<8x32xf32>, vector<32x32xf32>, vector<8x32xf32> -> vector<8x32xf32>
    %cst_8 = arith.constant 2.500000e-01 : f32
    %9 = vector.broadcast %cst_8 : f32 to vector<8x32xf32>
    %10 = arith.mulf %8, %9 : vector<8x32xf32>
    %c0_9 = arith.constant 0 : index
    %c0_10 = arith.constant 0 : index
    %11 = vector.load %arg6[%c0_9, %c0_10] : memref<32x32xf32, #tpu.memory_space<vmem>>, vector<32x32xf32>
    %cst_11 = arith.constant dense<0.000000e+00> : vector<8x32xf32>
    %12 = tpu.matmul %6, %11, %cst_11 {dimension_numbers = #tpu.dot_dimension_numbers<[1], [0], [0], [1], [0, 0, 1, 1], [], []>} : vector<8x32xf32>, vector<32x32xf32>, vector<8x32xf32> -> vector<8x32xf32>
    %c0_12 = arith.constant 0 : index
    %c0_13 = arith.constant 0 : index
    %13 = vector.load %arg7[%c0_12, %c0_13] : memref<32x32xf32, #tpu.memory_space<vmem>>, vector<32x32xf32>
    %cst_14 = arith.constant dense<0.000000e+00> : vector<8x32xf32>
    %14 = tpu.matmul %6, %13, %cst_14 {dimension_numbers = #tpu.dot_dimension_numbers<[1], [0], [0], [1], [0, 0, 1, 1], [], []>} : vector<8x32xf32>, vector<32x32xf32>, vector<8x32xf32> -> vector<8x32xf32>
    %15 = vector.extract_strided_slice %10 {offsets = [0, 0], sizes = [8, 16], strides = [1, 1]} : vector<8x32xf32> to vector<8x16xf32>
    %16 = vector.extract_strided_slice %12 {offsets = [0, 0], sizes = [8, 16], strides = [1, 1]} : vector<8x32xf32> to vector<8x16xf32>
    %17 = vector.extract_strided_slice %14 {offsets = [0, 0], sizes = [8, 16], strides = [1, 1]} : vector<8x32xf32> to vector<8x16xf32>
    %cst_15 = arith.constant dense<0.000000e+00> : vector<8x8xf32>
    %18 = tpu.matmul %15, %16, %cst_15 {dimension_numbers = #tpu.dot_dimension_numbers<[1], [1], [0], [0], [0, 0, 1, 0], [], []>} : vector<8x16xf32>, vector<8x16xf32>, vector<8x8xf32> -> vector<8x8xf32>
    %c0_16 = arith.constant 0 : index
    %c0_17 = arith.constant 0 : index
    %c0_18 = arith.constant 0 : index
    %19 = vector.load %arg11[%c0_16, %c0_17, %c0_18] : memref<2x8x1xf32, #tpu.memory_space<vmem>>, vector<1x8x1xf32>
    %20 = vector.shape_cast %19 : vector<1x8x1xf32> to vector<8x1xf32>
    %cst_19 = arith.constant dense<0xFF800000> : vector<8xf32>
    %21 = vector.multi_reduction <maximumf>, %18, %cst_19 [1] : vector<8x8xf32> to vector<8xf32>
    %22 = vector.shape_cast %21 : vector<8xf32> to vector<8x1xf32>
    %23 = arith.maximumf %20, %22 : vector<8x1xf32>
    %24 = arith.subf %20, %23 : vector<8x1xf32>
    %25 = math.exp %24 : vector<8x1xf32>
    %26 = vector.broadcast %23 : vector<8x1xf32> to vector<8x8xf32>
    %27 = arith.subf %18, %26 : vector<8x8xf32>
    %28 = math.exp %27 : vector<8x8xf32>
    %c0_20 = arith.constant 0 : index
    %c0_21 = arith.constant 0 : index
    %c0_22 = arith.constant 0 : index
    %29 = vector.load %arg12[%c0_20, %c0_21, %c0_22] : memref<2x8x1xf32, #tpu.memory_space<vmem>>, vector<1x8x1xf32>
    %30 = vector.shape_cast %29 : vector<1x8x1xf32> to vector<8x1xf32>
    %31 = arith.mulf %25, %30 : vector<8x1xf32>
    %cst_23 = arith.constant dense<0.000000e+00> : vector<8xf32>
    %32 = vector.multi_reduction <add>, %28, %cst_23 [1] : vector<8x8xf32> to vector<8xf32>
    %33 = vector.shape_cast %32 : vector<8xf32> to vector<8x1xf32>
    %34 = arith.addf %31, %33 : vector<8x1xf32>
    %c0_24 = arith.constant 0 : index
    %c0_25 = arith.constant 0 : index
    %c0_26 = arith.constant 0 : index
    %35 = vector.load %arg12[%c0_24, %c0_25, %c0_26] : memref<2x8x1xf32, #tpu.memory_space<vmem>>, vector<1x8x1xf32>
    %36 = vector.shape_cast %35 : vector<1x8x1xf32> to vector<8x1xf32>
    %37 = vector.shape_cast %34 : vector<8x1xf32> to vector<1x8x1xf32>
    tpu.vector_store %arg12[%c0_24, %c0_25, %c0_26], %37 {strides = array<i32>} : memref<2x8x1xf32, #tpu.memory_space<vmem>>, vector<1x8x1xf32>,
    %c0_27 = arith.constant 0 : index
    %c0_28 = arith.constant 0 : index
    %c0_29 = arith.constant 0 : index
    %38 = vector.load %arg13[%c0_27, %c0_28, %c0_29] : memref<2x8x16xf32, #tpu.memory_space<vmem>>, vector<1x8x16xf32>
    %39 = vector.shape_cast %38 : vector<1x8x16xf32> to vector<8x16xf32>
    %40 = vector.broadcast %25 : vector<8x1xf32> to vector<8x16xf32>
    %41 = arith.mulf %40, %39 : vector<8x16xf32>
    %cst_30 = arith.constant dense<0.000000e+00> : vector<8x16xf32>
    %42 = tpu.matmul %28, %17, %cst_30 {dimension_numbers = #tpu.dot_dimension_numbers<[1], [0], [0], [1], [0, 0, 1, 1], [], []>} : vector<8x8xf32>, vector<8x16xf32>, vector<8x16xf32> -> vector<8x16xf32>
    %43 = arith.addf %41, %42 : vector<8x16xf32>
    %c0_31 = arith.constant 0 : index
    %c0_32 = arith.constant 0 : index
    %c0_33 = arith.constant 0 : index
    %44 = vector.load %arg13[%c0_31, %c0_32, %c0_33] : memref<2x8x16xf32, #tpu.memory_space<vmem>>, vector<1x8x16xf32>
    %45 = vector.shape_cast %44 : vector<1x8x16xf32> to vector<8x16xf32>
    %46 = vector.shape_cast %43 : vector<8x16xf32> to vector<1x8x16xf32>
    tpu.vector_store %arg13[%c0_31, %c0_32, %c0_33], %46 {strides = array<i32>} : memref<2x8x16xf32, #tpu.memory_space<vmem>>, vector<1x8x16xf32>,
    %c0_34 = arith.constant 0 : index
    %c0_35 = arith.constant 0 : index
    %c0_36 = arith.constant 0 : index
    %47 = vector.load %arg11[%c0_34, %c0_35, %c0_36] : memref<2x8x1xf32, #tpu.memory_space<vmem>>, vector<1x8x1xf32>
    %48 = vector.shape_cast %47 : vector<1x8x1xf32> to vector<8x1xf32>
    %49 = vector.shape_cast %23 : vector<8x1xf32> to vector<1x8x1xf32>
    tpu.vector_store %arg11[%c0_34, %c0_35, %c0_36], %49 {strides = array<i32>} : memref<2x8x1xf32, #tpu.memory_space<vmem>>, vector<1x8x1xf32>,
    %50 = vector.extract_strided_slice %10 {offsets = [0, 16], sizes = [8, 16], strides = [1, 1]} : vector<8x32xf32> to vector<8x16xf32>
    %51 = vector.extract_strided_slice %12 {offsets = [0, 16], sizes = [8, 16], strides = [1, 1]} : vector<8x32xf32> to vector<8x16xf32>
    %52 = vector.extract_strided_slice %14 {offsets = [0, 16], sizes = [8, 16], strides = [1, 1]} : vector<8x32xf32> to vector<8x16xf32>
    %cst_37 = arith.constant dense<0.000000e+00> : vector<8x8xf32>
    %53 = tpu.matmul %50, %51, %cst_37 {dimension_numbers = #tpu.dot_dimension_numbers<[1], [1], [0], [0], [0, 0, 1, 0], [], []>} : vector<8x16xf32>, vector<8x16xf32>, vector<8x8xf32> -> vector<8x8xf32>
    %c1 = arith.constant 1 : index
    %c0_38 = arith.constant 0 : index
    %c0_39 = arith.constant 0 : index
    %54 = vector.load %arg11[%c1, %c0_38, %c0_39] : memref<2x8x1xf32, #tpu.memory_space<vmem>>, vector<1x8x1xf32>
    %55 = vector.shape_cast %54 : vector<1x8x1xf32> to vector<8x1xf32>
    %cst_40 = arith.constant dense<0xFF800000> : vector<8xf32>
    %56 = vector.multi_reduction <maximumf>, %53, %cst_40 [1] : vector<8x8xf32> to vector<8xf32>
    %57 = vector.shape_cast %56 : vector<8xf32> to vector<8x1xf32>
    %58 = arith.maximumf %55, %57 : vector<8x1xf32>
    %59 = arith.subf %55, %58 : vector<8x1xf32>
    %60 = math.exp %59 : vector<8x1xf32>
    %61 = vector.broadcast %58 : vector<8x1xf32> to vector<8x8xf32>
    %62 = arith.subf %53, %61 : vector<8x8xf32>
    %63 = math.exp %62 : vector<8x8xf32>
    %c1_41 = arith.constant 1 : index
    %c0_42 = arith.constant 0 : index
    %c0_43 = arith.constant 0 : index
    %64 = vector.load %arg12[%c1_41, %c0_42, %c0_43] : memref<2x8x1xf32, #tpu.memory_space<vmem>>, vector<1x8x1xf32>
    %65 = vector.shape_cast %64 : vector<1x8x1xf32> to vector<8x1xf32>
    %66 = arith.mulf %60, %65 : vector<8x1xf32>
    %cst_44 = arith.constant dense<0.000000e+00> : vector<8xf32>
    %67 = vector.multi_reduction <add>, %63, %cst_44 [1] : vector<8x8xf32> to vector<8xf32>
    %68 = vector.shape_cast %67 : vector<8xf32> to vector<8x1xf32>
    %69 = arith.addf %66, %68 : vector<8x1xf32>
    %c1_45 = arith.constant 1 : index
    %c0_46 = arith.constant 0 : index
    %c0_47 = arith.constant 0 : index
    %70 = vector.load %arg12[%c1_45, %c0_46, %c0_47] : memref<2x8x1xf32, #tpu.memory_space<vmem>>, vector<1x8x1xf32>
    %71 = vector.shape_cast %70 : vector<1x8x1xf32> to vector<8x1xf32>
    %72 = vector.shape_cast %69 : vector<8x1xf32> to vector<1x8x1xf32>
    tpu.vector_store %arg12[%c1_45, %c0_46, %c0_47], %72 {strides = array<i32>} : memref<2x8x1xf32, #tpu.memory_space<vmem>>, vector<1x8x1xf32>,
    %c1_48 = arith.constant 1 : index
    %c0_49 = arith.constant 0 : index
    %c0_50 = arith.constant 0 : index
    %73 = vector.load %arg13[%c1_48, %c0_49, %c0_50] : memref<2x8x16xf32, #tpu.memory_space<vmem>>, vector<1x8x16xf32>
    %74 = vector.shape_cast %73 : vector<1x8x16xf32> to vector<8x16xf32>
    %75 = vector.broadcast %60 : vector<8x1xf32> to vector<8x16xf32>
    %76 = arith.mulf %75, %74 : vector<8x16xf32>
    %cst_51 = arith.constant dense<0.000000e+00> : vector<8x16xf32>
    %77 = tpu.matmul %63, %52, %cst_51 {dimension_numbers = #tpu.dot_dimension_numbers<[1], [0], [0], [1], [0, 0, 1, 1], [], []>} : vector<8x8xf32>, vector<8x16xf32>, vector<8x16xf32> -> vector<8x16xf32>
    %78 = arith.addf %76, %77 : vector<8x16xf32>
    %c1_52 = arith.constant 1 : index
    %c0_53 = arith.constant 0 : index
    %c0_54 = arith.constant 0 : index
    %79 = vector.load %arg13[%c1_52, %c0_53, %c0_54] : memref<2x8x16xf32, #tpu.memory_space<vmem>>, vector<1x8x16xf32>
    %80 = vector.shape_cast %79 : vector<1x8x16xf32> to vector<8x16xf32>
    %81 = vector.shape_cast %78 : vector<8x16xf32> to vector<1x8x16xf32>
    tpu.vector_store %arg13[%c1_52, %c0_53, %c0_54], %81 {strides = array<i32>} : memref<2x8x16xf32, #tpu.memory_space<vmem>>, vector<1x8x16xf32>,
    %c1_55 = arith.constant 1 : index
    %c0_56 = arith.constant 0 : index
    %c0_57 = arith.constant 0 : index
    %82 = vector.load %arg11[%c1_55, %c0_56, %c0_57] : memref<2x8x1xf32, #tpu.memory_space<vmem>>, vector<1x8x1xf32>
    %83 = vector.shape_cast %82 : vector<1x8x1xf32> to vector<8x1xf32>
    %84 = vector.shape_cast %58 : vector<8x1xf32> to vector<1x8x1xf32>
    tpu.vector_store %arg11[%c1_55, %c0_56, %c0_57], %84 {strides = array<i32>} : memref<2x8x1xf32, #tpu.memory_space<vmem>>, vector<1x8x1xf32>,
    %c1_i32 = arith.constant 1 : i32
    %85 = arith.cmpi eq, %arg2, %c1_i32 : i32
    %86 = arith.extui %85 : i1 to i32
    %c0_i32_58 = arith.constant 0 : i32
    %87 = arith.cmpi ne, %86, %c0_i32_58 : i32
    scf.if %87 {
      %c0_59 = arith.constant 0 : index
      %c0_60 = arith.constant 0 : index
      %88 = vector.load %arg8[%c0_59, %c0_60] : memref<32x32xf32, #tpu.memory_space<vmem>>, vector<32x32xf32>
      %c0_61 = arith.constant 0 : index
      %c0_62 = arith.constant 0 : index
      %c0_63 = arith.constant 0 : index
      %89 = vector.load %arg12[%c0_61, %c0_62, %c0_63] : memref<2x8x1xf32, #tpu.memory_space<vmem>>, vector<1x8x1xf32>
      %90 = vector.shape_cast %89 : vector<1x8x1xf32> to vector<8x1xf32>
      %91 = tpu.reciprocal %90 {approx = true} : vector<8x1xf32> -> vector<8x1xf32>
      %c0_64 = arith.constant 0 : index
      %c0_65 = arith.constant 0 : index
      %c0_66 = arith.constant 0 : index
      %92 = vector.load %arg13[%c0_64, %c0_65, %c0_66] : memref<2x8x16xf32, #tpu.memory_space<vmem>>, vector<1x8x16xf32>
      %93 = vector.shape_cast %92 : vector<1x8x16xf32> to vector<8x16xf32>
      %94 = vector.broadcast %91 : vector<8x1xf32> to vector<8x16xf32>
      %95 = arith.mulf %93, %94 : vector<8x16xf32>
      %96 = vector.extract_strided_slice %88 {offsets = [0, 0], sizes = [16, 32], strides = [1, 1]} : vector<32x32xf32> to vector<16x32xf32>
      %cst_67 = arith.constant dense<0.000000e+00> : vector<8x32xf32>
      %97 = tpu.matmul %95, %96, %cst_67 {dimension_numbers = #tpu.dot_dimension_numbers<[1], [0], [0], [1], [0, 0, 1, 1], [], []>} : vector<8x16xf32>, vector<16x32xf32>, vector<8x32xf32> -> vector<8x32xf32>
      %c1_68 = arith.constant 1 : index
      %c0_69 = arith.constant 0 : index
      %c0_70 = arith.constant 0 : index
      %98 = vector.load %arg12[%c1_68, %c0_69, %c0_70] : memref<2x8x1xf32, #tpu.memory_space<vmem>>, vector<1x8x1xf32>
      %99 = vector.shape_cast %98 : vector<1x8x1xf32> to vector<8x1xf32>
      %100 = tpu.reciprocal %99 {approx = true} : vector<8x1xf32> -> vector<8x1xf32>
      %c1_71 = arith.constant 1 : index
      %c0_72 = arith.constant 0 : index
      %c0_73 = arith.constant 0 : index
      %101 = vector.load %arg13[%c1_71, %c0_72, %c0_73] : memref<2x8x16xf32, #tpu.memory_space<vmem>>, vector<1x8x16xf32>
      %102 = vector.shape_cast %101 : vector<1x8x16xf32> to vector<8x16xf32>
      %103 = vector.broadcast %100 : vector<8x1xf32> to vector<8x16xf32>
      %104 = arith.mulf %102, %103 : vector<8x16xf32>
      %105 = vector.extract_strided_slice %88 {offsets = [16, 0], sizes = [16, 32], strides = [1, 1]} : vector<32x32xf32> to vector<16x32xf32>
      %cst_74 = arith.constant dense<0.000000e+00> : vector<8x32xf32>
      %106 = tpu.matmul %104, %105, %cst_74 {dimension_numbers = #tpu.dot_dimension_numbers<[1], [0], [0], [1], [0, 0, 1, 1], [], []>} : vector<8x16xf32>, vector<16x32xf32>, vector<8x32xf32> -> vector<8x32xf32>
      %107 = arith.addf %97, %106 : vector<8x32xf32>
      %c0_75 = arith.constant 0 : index
      %c0_76 = arith.constant 0 : index
      %108 = vector.load %arg9[%c0_75, %c0_76] : memref<1x32xf32, #tpu.memory_space<vmem>>, vector<1x32xf32>
      %109 = vector.broadcast %108 : vector<1x32xf32> to vector<8x32xf32>
      %110 = arith.addf %107, %109 : vector<8x32xf32>
      %c0_77 = arith.constant 0 : index
      %c0_78 = arith.constant 0 : index
      %c0_79 = arith.constant 0 : index
      %111 = vector.load %arg10[%c0_77, %c0_78, %c0_79] : memref<1x8x32xf32, #tpu.memory_space<vmem>>, vector<1x8x32xf32>
      %112 = vector.shape_cast %111 : vector<1x8x32xf32> to vector<8x32xf32>
      %113 = vector.shape_cast %110 : vector<8x32xf32> to vector<1x8x32xf32>
      tpu.vector_store %arg10[%c0_77, %c0_78, %c0_79], %113 {strides = array<i32>} : memref<1x8x32xf32, #tpu.memory_space<vmem>>, vector<1x8x32xf32>,
    } else {
    }
    return
  }
  func.func @transform_0(%arg0: i32, %arg1: i32, %arg2: i32) -> (i32, i32, i32) {
    %c0_i32 = arith.constant 0 : i32
    %c0_i32_0 = arith.constant 0 : i32
    return %arg0, %arg1, %c0_i32 : i32, i32, i32
  }
  func.func @transform_1(%arg0: i32, %arg1: i32, %arg2: i32) -> (i32, i32, i32) {
    %c0_i32 = arith.constant 0 : i32
    %c0_i32_0 = arith.constant 0 : i32
    return %arg0, %arg2, %c0_i32 : i32, i32, i32
  }
  func.func @transform_2(%arg0: i32, %arg1: i32, %arg2: i32) -> (i32, i32) {
    %c0_i32 = arith.constant 0 : i32
    %c0_i32_0 = arith.constant 0 : i32
    %c0_i32_1 = arith.constant 0 : i32
    return %c0_i32, %c0_i32_0 : i32, i32
  }
  func.func @transform_3(%arg0: i32, %arg1: i32, %arg2: i32) -> (i32, i32) {
    %c0_i32 = arith.constant 0 : i32
    %c0_i32_0 = arith.constant 0 : i32
    %c0_i32_1 = arith.constant 0 : i32
    return %c0_i32, %c0_i32_0 : i32, i32
  }
  func.func @transform_4(%arg0: i32, %arg1: i32, %arg2: i32) -> (i32, i32) {
    %c0_i32 = arith.constant 0 : i32
    %c0_i32_0 = arith.constant 0 : i32
    %c0_i32_1 = arith.constant 0 : i32
    return %c0_i32, %c0_i32_0 : i32, i32
  }
  func.func @transform_5(%arg0: i32, %arg1: i32, %arg2: i32) -> (i32, i32) {
    %c0_i32 = arith.constant 0 : i32
    %c0_i32_0 = arith.constant 0 : i32
    %c0_i32_1 = arith.constant 0 : i32
    return %c0_i32, %c0_i32_0 : i32, i32
  }
  func.func @transform_6(%arg0: i32, %arg1: i32, %arg2: i32) -> (i32, i32) {
    %c0_i32 = arith.constant 0 : i32
    %c0_i32_0 = arith.constant 0 : i32
    %c0_i32_1 = arith.constant 0 : i32
    return %c0_i32, %c0_i32_0 : i32, i32
  }
  func.func @transform_7(%arg0: i32, %arg1: i32, %arg2: i32) -> (i32, i32, i32) {
    %c0_i32 = arith.constant 0 : i32
    %c0_i32_0 = arith.constant 0 : i32
    return %arg0, %arg1, %c0_i32 : i32, i32, i32
  }
}

</mosaic_0001>

<bundles_post_ra>
// kernel: tpu_custom_call.1
= control target key start
LH: loop header
LB: loop body
LE: loop exit
PB: predicated region body
PF: predicated region fallthrough
CT: control target
= control target key end

     0   :  { %s2651_s0 = inlined_call_operand.hbm [shape: f32[2,16,32], index: 0, kind: input, shape index: {}]   ;;  %s2652_s1 = inlined_call_operand.hbm [shape: f32[2,16,32], index: 1, kind: input, shape index: {}]   ;;  %s2653_s2 = inlined_call_operand.hbm [shape: f32[32,32], index: 2, kind: input, shape index: {}]   ;;  %s2654_s3 = inlined_call_operand.hbm [shape: f32[32,32], index: 3, kind: input, shape index: {}]   ;;  %s2655_s4 = inlined_call_operand.hbm [shape: f32[32,32], index: 4, kind: input, shape index: {}]   ;;  %s2656_s5 = inlined_call_operand.hbm [shape: f32[32,32], index: 5, kind: input, shape index: {}]   ;;  %s2657_s6 = inlined_call_operand.vmem [shape: f32[1,32], index: 6, kind: input, shape index: {}]   ;;  %s2658_s7 = inlined_call_operand.hbm [shape: f32[2,16,32], index: 7, kind: output, shape index: {}]  }
   0x1   :  { %2672 = sst [smem:[#allocation32_spill]] %s2652_s1 }
   0x2   :  { %2673 = sst [smem:[#allocation33_spill]] %s2653_s2 }
   0x3   :  { %2674 = sst [smem:[#allocation34_spill]] %s2654_s3 }
   0x4   :  { %2675 = sst [smem:[#allocation35_spill]] %s2655_s4 }
   0x5   :  { %2676 = sst [smem:[#allocation36_spill]] %s2656_s5 }
   0x6   :  { %2677 = sst [smem:[#allocation37_spill]] %s2657_s6 }
   0x7   :  { %2678 = sst [smem:[#allocation38_spill]] %s2658_s7 }
   0x8   :  { %12 = vsyncpa [#allocation6], 0 }
   0x9   :  { %14 = vsyncpa [#allocation6 + $0x1], 0 }
   0xa   :  { %15 = vsyncpa [#allocation9], 0 }
   0xb   :  { %17 = vsyncpa [#allocation9 + $0x1], 0 }
   0xc   :  { %18 = vsyncpa [#allocation12], 0 }
   0xd   :  { %19 = vsyncpa [#allocation15], 0 }
   0xe   :  { %20 = vsyncpa [#allocation7], 0 }
   0xf   :  { %22 = vsyncpa [#allocation7 + $0x1], 0  ;;  %s2130_s24 = smov 0   ;;  %s2132_s25 = smov 0  }
  0x10   :  { %s2134_s26 = smov 0   ;;  %s2136_s27 = smov 0  }
  0x11   :  { %s2138_s28 = smov 0   ;;  %s2140_s29 = smov 0  }
  0x12   :  { %s2142_s30 = smov 0   ;;  %s2144_s8 = smov 0  }
  0x13   :  { %s2146_s9 = smov 0   ;;  %s2148_s10 = smov 0  }
  0x14   :  { %s2150_s11 = smov 0   ;;  %s2152_s12 = smov 0  }
  0x15   :  { %s2154_s13 = smov 0  }
  0x16 LB: > { %2679 = sst [smem:[#allocation23_spill]] %s2020_s24  ;;  %s2196_s14 = sadd.s32 4294967295, %s2068_s13   ;;  %s2068_s13 = sphi %s2154_s13, %s28_s13   ;;  %s2064_s12 = sphi %s2152_s12, %s2743_s12   ;;  %s2060_s11 = sphi %s2150_s11, %s2742_s11   ;;  %s2056_s10 = sphi %s2148_s10, %s2741_s10   ;;  %s2052_s9 = sphi %s2146_s9, %s2740_s9   ;;  %s2048_s8 = sphi %s2144_s8, %s2739_s8   ;;  %s2044_s30 = sphi %s2142_s30, %s2738_s30   ;;  %s2040_s29 = sphi %s2140_s29, %s2737_s29   ;;  %s2036_s28 = sphi %s2138_s28, %s2736_s28   ;;  %s2032_s27 = sphi %s2136_s27, %s2735_s27   ;;  %s2028_s26 = sphi %s2134_s26, %s2734_s26   ;;  %s2024_s25 = sphi %s2132_s25, %s2733_s25   ;;  %s2020_s24 = sphi %s2130_s24, %s2732_s24  }
  0x17   : > { %2680 = sst [smem:[#allocation24_spill]] %s2044_s30  ;;  %p1391_p0 = scmp.ge.s32.totalorder %s2068_s13, 1 }
  0x18   : > { %2681 = sst [smem:[#allocation25_spill]] %s2048_s8  ;;  %p2662_p1 = scmp.eq.s32.totalorder %s2196_s14, 0 }
  0x19   : > { %2682 = sst [smem:[#allocation26_spill]] %s2052_s9  ;;  %p241_p2 = scmp.lt.s32.totalorder %s2068_s13, 9 }
  0x1a   : > { %s2070_s16 = smov [#allocation10]   ;;  %s2071_s19 = smov [#allocation11]  }
  0x1b   : > { %p2201_p3 = pnand %p1391_p0, %p241_p2  ;;  %s253_s17 = sshll.u32 %s2070_s16, 4  ;;  %s2205_s17 = int_to_ptr.vmem [resolvable:$true] %s253_s17 }
  0x1c   : > { %s266_s20 = sshll.u32 %s2071_s19, 4  ;;  %s2072_s21 = smov [#allocation13]   ;;  %s2215_s20 = int_to_ptr.vmem [resolvable:$true] %s266_s20 }
  0x1d   : > { %s2683_s15 = scalar_select %p2201_p3, 1, 0 }
  0x1e   : > { %p1572_p4 = pneg %p2201_p3  ;;  %s2217_s22 = sshll.u32 %s2072_s21, 4  ;;  %s280_s22 = int_to_ptr.vmem [resolvable:$true] %s2217_s22 }
  0x1f   : > { %2684 = sst [smem:[#allocation27_spill]] %s2683_s15  ;;  %s2686_s2 = sld [smem:[#allocation33_spill]] }
  0x20   : > { %p2211_p5 = pnand %p1572_p4, %p2662_p1 }
  0x22   : > { %p2227_p7 = pneg %p2211_p5 }
  0x25   : > { %s1742_s16 = scalar_lea.hbm %s2686_s2, 512 }
  0x26   : > { %p1743_p6 = scmp.ne.s32.totalorder %s2686_s2, %s1742_s16  ;;  %p1749_p10 = scmp.lt.u32.totalorder %s1742_s16, %s2686_s2 }
  0x28   : > { %p1745_p8 = pnand %p2227_p7, %p1743_p6 }
  0x2a   : > { %p1746_p9 = pneg %p1745_p8 }
  0x2c   : > { %p1751_p11 = pnand %p1749_p10, %p1746_p9 }
  0x2e   : > { %1754 = shalt.err (!%p1751_p11)
}
  0x2f   : > { %s1755_s7 = scalar_lea.vmem %s2205_s17, 512  ;;  %p1763_p2 = scmp.lt.s32.totalorder %s2205_s17, %s2205_s17 }
  0x30   : > { %p1756_p12 = scmp.ne.s32.totalorder %s2205_s17, %s1755_s7  ;;  %p1764_p4 = scmp.lt.s32.totalorder %s1755_s7, %s1755_s7 }
  0x32   : > { %p1758_p13 = pnand %p1756_p12, %p2227_p7  ;;  %p1765_p6 = por %p1764_p4, %p1763_p2 }
  0x34   : > { %p1759_p0 = pneg %p1758_p13 }
  0x36   : > { %p1766_p8 = pnand %p1765_p6, %p1759_p0 }
  0x38   : > { %1769 = shalt.err (!%p1766_p8)
}
  0x39   : > { %s2073_s8 = smov 128   ;;  %s2074_s9 = smov 8  }
  0x3a   : > { %1575 = dma.hbm_to_vmem [thread:$0]  (!%p2211_p5), %s2686_s2, 512, %s2205_s17, [#allocation9], %s2073_s8, %s2073_s8, %s2074_s9  }
  0x3b   : > { %s2688_s3 = sld [smem:[#allocation34_spill]] }
  0x41   : > { %s1770_s7 = scalar_lea.hbm %s2688_s3, 512 }
  0x42   : > { %p1771_p9 = scmp.ne.s32.totalorder %s2688_s3, %s1770_s7  ;;  %p1777_p12 = scmp.lt.u32.totalorder %s1770_s7, %s2688_s3 }
  0x44   : > { %p1773_p10 = pnand %p1771_p9, %p2227_p7 }
  0x46   : > { %p1774_p11 = pneg %p1773_p10 }
  0x48   : > { %p1779_p13 = pnand %p1777_p12, %p1774_p11 }
  0x4a   : > { %1782 = shalt.err (!%p1779_p13)
}
  0x4b   : > { %s1783_s17 = scalar_lea.vmem %s2215_s20, 512  ;;  %p1791_p6 = scmp.lt.s32.totalorder %s2215_s20, %s2215_s20 }
  0x4c   : > { %p1784_p0 = scmp.ne.s32.totalorder %s2215_s20, %s1783_s17  ;;  %p1792_p8 = scmp.lt.s32.totalorder %s1783_s17, %s1783_s17 }
  0x4e   : > { %p1786_p2 = pnand %p1784_p0, %p2227_p7  ;;  %p1793_p9 = por %p1792_p8, %p1791_p6 }
  0x50   : > { %p1787_p4 = pneg %p1786_p2 }
  0x52   : > { %p1794_p10 = pnand %p1793_p9, %p1787_p4 }
  0x54   : > { %1797 = shalt.err (!%p1794_p10)
}
  0x55   : > { %1578 = dma.hbm_to_vmem [thread:$0]  (!%p2211_p5), %s2688_s3, 512, %s2215_s20, [#allocation12], %s2073_s8, %s2073_s8, %s2074_s9  }
  0x56   : > { %s2689_s4 = sld [smem:[#allocation35_spill]] }
  0x5c   : > { %s1798_s23 = scalar_lea.hbm %s2689_s4, 512 }
  0x5d   : > { %p1799_p11 = scmp.ne.s32.totalorder %s2689_s4, %s1798_s23  ;;  %p1805_p0 = scmp.lt.u32.totalorder %s1798_s23, %s2689_s4 }
  0x5f   : > { %p1801_p12 = pnand %p1799_p11, %p2227_p7 }
  0x61   : > { %p1802_p13 = pneg %p1801_p12 }
  0x63   : > { %p1807_p2 = pnand %p1805_p0, %p1802_p13 }
  0x65   : > { %1810 = shalt.err (!%p1807_p2)
}
  0x66   : > { %s1811_s17 = scalar_lea.vmem %s280_s22, 512  ;;  %p1819_p9 = scmp.lt.s32.totalorder %s280_s22, %s280_s22 }
  0x67   : > { %p1812_p4 = scmp.ne.s32.totalorder %s280_s22, %s1811_s17  ;;  %p1820_p10 = scmp.lt.s32.totalorder %s1811_s17, %s1811_s17 }
  0x69   : > { %p1814_p6 = pnand %p1812_p4, %p2227_p7  ;;  %p1821_p1 = por %p1820_p10, %p1819_p9 }
  0x6b   : > { %p1815_p8 = pneg %p1814_p6 }
  0x6d   : > { %p1822_p3 = pnand %p1821_p1, %p1815_p8 }
  0x6f   : > { %1825 = shalt.err (!%p1822_p3)
}
  0x70   : > { %1581 = dma.hbm_to_vmem [thread:$0]  (!%p2211_p5), %s2689_s4, 512, %s280_s22, [#allocation12], %s2073_s8, %s2073_s8, %s2074_s9  }
  0x71   : > { %s2075_s24 = smov [#allocation14]   ;;  %s2690_s5 = sld [smem:[#allocation36_spill]] }
  0x72   : > { %s292_s30 = sshll.u32 %s2075_s24, 4  ;;  %s293_s30 = int_to_ptr.vmem [resolvable:$true] %s292_s30 }
  0x77   : > { %s1826_s16 = scalar_lea.hbm %s2690_s5, 512 }
  0x78   : > { %p1827_p1 = scmp.ne.s32.totalorder %s2690_s5, %s1826_s16  ;;  %p1833_p12 = scmp.lt.u32.totalorder %s1826_s16, %s2690_s5 }
  0x7a   : > { %p1829_p3 = pnand %p1827_p1, %p2227_p7 }
  0x7c   : > { %p1830_p11 = pneg %p1829_p3 }
  0x7e   : > { %p1835_p13 = pnand %p1833_p12, %p1830_p11 }
  0x80   : > { %1838 = shalt.err (!%p1835_p13)
}
  0x81   : > { %s1839_s22 = scalar_lea.vmem %s293_s30, 512  ;;  %p1847_p6 = scmp.lt.s32.totalorder %s293_s30, %s293_s30 }
  0x82   : > { %p1840_p0 = scmp.ne.s32.totalorder %s293_s30, %s1839_s22  ;;  %p1848_p8 = scmp.lt.s32.totalorder %s1839_s22, %s1839_s22 }
  0x84   : > { %p1842_p2 = pnand %p1840_p0, %p2227_p7  ;;  %p1849_p9 = por %p1848_p8, %p1847_p6 }
  0x86   : > { %p1843_p4 = pneg %p1842_p2 }
  0x88   : > { %p1850_p10 = pnand %p1849_p9, %p1843_p4 }
  0x8a   : > { %1853 = shalt.err (!%p1850_p10)
}
  0x8b   : > { %1584 = dma.hbm_to_vmem [thread:$0]  (!%p2211_p5), %s2690_s5, 512, %s293_s30, [#allocation15], %s2073_s8, %s2073_s8, %s2074_s9  }
  0x8c   : > { %s1390_s6 = sadd.s32 4294967294, %s2068_s13   ;;  %s40_s18 = sadd.s32 1, %s2056_s10 }
  0x8d   : > { %p41_p7 = scmp.ge.s32.totalorder %s40_s18, 2  ;;  %s43_s24 = sadd.s32 1, %s2060_s11 }
  0x8e   : > { %s47_s15 = sadd.s32 1, %s2064_s12  ;;  %s56_s23 = sadd.s32 1, %s2040_s29 }
  0x8f   : > { %s2745_s18 = smov (%p41_p7, %s40_s18), 0  ;;  %s2747_s24 = smov (!%p41_p7, %s43_s24), %s2060_s11 }
  0x90   : > { %2691 = sst [smem:[#allocation28_spill]] %s2745_s18  ;;  %p63_p5 = scmp.ne.s32.totalorder %s2040_s29, %s2036_s28 }
  0x91   : > { %p2669_p1 = scmp.eq.s32.totalorder %s2068_s13, 0  ;;  %p45_p3 = scmp.ge.s32.totalorder %s2747_s24, 2 }
  0x92   : > { %p69_p11 = scmp.ne.s32.totalorder %s2036_s28, %s2032_s27  ;;  %s80_s9 = ssub.s32 %s2056_s10, %s2745_s18 }
  0x93   : > { %p2338_p12 = por %p2669_p1, %p63_p5  ;;  %s2749_s24 = smov (%p45_p3, %s2747_s24), 0 }
  0x94   : > { %2693 = sst [smem:[#allocation29_spill]] %s2749_s24  ;;  %s2751_s15 = smov (!%p45_p3, %s47_s15), %s2064_s12 }
  0x95   : > { %s52_s30 = ssub.s32 %s2060_s11, %s2749_s24  ;;  %p2694_p13 = scmp.eq.s32.totalorder %s2196_s14, 0 }
  0x96   : > { %p49_p2 = scmp.ge.s32.totalorder %s2751_s15, 2  ;;  %p228_p4 = scmp.eq.s32.totalorder %s2196_s14, 7 }
  0x97   : > { %p2354_p0 = por %p2694_p13, %p69_p11  ;;  %p234_p6 = scmp.eq.s32.totalorder %s1390_s6, 7 }
  0x98   : > { %p2668_p8 = scmp.lt.s32.totalorder %s2068_s13, 8  ;;  %s2753_s15 = smov (%p49_p2, %s2751_s15), 0 }
  0x99   : > { %2696 = sst [smem:[#allocation30_spill]] %s2753_s15  ;;  %p2365_p9 = por %p228_p4, %p63_p5 }
  0x9a   : > { %p2372_p10 = por %p234_p6, %p69_p11  ;;  %s51_s7 = ssub.s32 %s2064_s12, %s2753_s15 }
  0x9b   : > { %s2697_s19 = scalar_select %p2365_p9, 1, 0 }
  0x9c   : > { %s2698_s21 = scalar_select %p2372_p10, 1, 0 }
  0x9d   : > { %s309_s17 = sand.u32 1, %s2040_s29   ;;  %s53_s22 = sor.u32 %s52_s30, %s51_s7 }
  0x9e   : > { %2699 = sst [smem:[#allocation31_spill]] %s2698_s21  ;;  %s2379_s20 = sor.u32 %s80_s9, %s51_s7 }
  0x9f   : > { %p54_p7 = scmp.eq.s32.totalorder %s53_s22, 0  ;;  %s1397_s1 = sshll.u32 %s309_s17, 3 }
  0xa0   : > { %s1398_s2 = sshll.u32 %s2064_s12, 1  ;;  %s313_s4 = scalar_lea.vmem [#allocation5], %s1397_s1 }
  0xa1   : > { %s2383_s6 = scalar_select %p54_p7, %s2040_s29, %s56_s23  }
  0xa2   : > { %s318_s3 = sadd.s32 %s2060_s11, %s1398_s2  ;;  %s322_s5 = sshll.u32 %s313_s4, 4  ;;  %s2387_s5 = int_to_ptr.vmem [resolvable:$true] %s322_s5 }
  0xa3   : > { %s1399_s24 = sshll.u32 %s318_s3, 7  ;;  %p2398_p5 = pnand %p2668_p8, %p2338_p12 }
  0xa4   : > { %s2392_s21 = scalar_lea.hbm %s2651_s0, %s1399_s24  ;;  %s2403_s3 = sadd.s32 %s2056_s10, %s1398_s2 }
  0xa5   : > { %s310_s4 = scalar_lea.sflag [#allocation6], %s309_s17  ;;  %s1854_s9 = scalar_lea.hbm %s2392_s21, 128 }
  0xa6   : > { %p1855_p11 = scmp.ne.s32.totalorder %s2392_s21, %s1854_s9  ;;  %p1856_p13 = pneg %p2398_p5 }
  0xa7   : > { %s1859_s15 = scalar_lea.hbm %s2651_s0, 512  ;;  %p1860_p12 = scmp.lt.u32.totalorder %s2392_s21, %s2651_s0 }
  0xa8   : > { %p1857_p2 = pnand %p1856_p13, %p1855_p11  ;;  %p1861_p6 = scmp.lt.u32.totalorder %s1859_s15, %s1854_s9 }
  0xa9   : > { %p1863_p8 = scmp.lt.u32.totalorder %s1854_s9, %s2392_s21 }
  0xaa   : > { %p1858_p4 = pneg %p1857_p2  ;;  %p1862_p7 = por %p1861_p6, %p1860_p12 }
  0xac   : > { %p1864_p1 = por %p1863_p8, %p1862_p7 }
  0xae   : > { %p1865_p3 = pnand %p1864_p1, %p1858_p4 }
  0xb0   : > { %1868 = shalt.err (!%p1865_p3)
}
  0xb1   : > { %s1869_s2 = scalar_lea.vmem %s2387_s5, 128  ;;  %s2076_s7 = smov [#allocation5]  }
  0xb2   : > { %p1870_p11 = scmp.ne.s32.totalorder %s2387_s5, %s1869_s2  ;;  %s1874_s17 = sshll.u32 %s2076_s7, 4  ;;  %s1875_s17 = int_to_ptr.vmem [resolvable:$false] %s1874_s17 }
  0xb3   : > { %s1876_s22 = scalar_lea.vmem %s1875_s17, 256  ;;  %p1877_p9 = scmp.lt.s32.totalorder %s2387_s5, %s1875_s17 }
  0xb4   : > { %p1872_p2 = pnand %p1870_p11, %p1856_p13  ;;  %p1878_p12 = scmp.lt.s32.totalorder %s1876_s22, %s1869_s2 }
  0xb6   : > { %p1873_p10 = pneg %p1872_p2  ;;  %p1879_p6 = por %p1878_p12, %p1877_p9 }
  0xb8   : > { %p1880_p8 = pnand %p1879_p6, %p1873_p10 }
  0xba   : > { %1883 = shalt.err (!%p1880_p8)
}
  0xbb   : > { %s2701_s1 = sld [smem:[#allocation23_spill]]  ;;  %s84_s9 = sadd.s32 1, %s2028_s26 }
  0xbc   : > { %1588 = dma.hbm_to_vmem [thread:$0]  (!%p2398_p5), %s2392_s21, 128, %s2387_s5, %s310_s4  }
  0xbd   : > { %p91_p1 = scmp.ne.s32.totalorder %s2028_s26, %s2024_s25  ;;  %p2702_p9 = scmp.eq.s32.totalorder %s2379_s20, 0 }
  0xbe   : > { %p2703_p10 = scmp.eq.s32.totalorder %s2068_s13, 0  ;;  %s329_s18 = sand.u32 1, %s2068_s13  }
  0xbf   : > { %s2436_s23 = scalar_select %p2702_p9, %s2028_s26, %s84_s9  }
  0xc0   : > { %p93_p3 = por %p91_p1, %p2703_p10  ;;  %s331_s24 = sand.u32 1, %s2028_s26  }
  0xc1   : > { %p97_p13 = scmp.ne.s32.totalorder %s2024_s25, %s2701_s1  ;;  %p2704_p4 = scmp.eq.s32.totalorder %s2196_s14, 0 }
  0xc2   : > { %s1400_s8 = sshll.u32 %s331_s24, 3  ;;  %s1402_s30 = sshll.u32 %s2403_s3, 7 }
  0xc3   : > { %p2446_p7 = por %p97_p13, %p2704_p4  ;;  %s2706_s5 = sld [smem:[#allocation32_spill]] }
  0xc4   : > { %s333_s20 = scalar_lea.vmem [#allocation8], %s1400_s8  ;;  %p2707_p5 = scmp.lt.s32.totalorder %s2068_s13, 8 }
  0xc5   : > { %s2705_s15 = scalar_select %p2446_p7, 1, 0 }
  0xc6   : > { %s342_s4 = sshll.u32 %s333_s20, 4  ;;  %p2458_p11 = pnand %p2707_p5, %p93_p3  ;;  %s2462_s4 = int_to_ptr.vmem [resolvable:$true] %s342_s4 }
  0xc7   : > { %s330_s3 = scalar_lea.sflag [#allocation9], %s329_s18 }
  0xc8   : > { %p1886_p12 = pneg %p2458_p11 }
  0xc9   : > { %s2454_s21 = scalar_lea.hbm %s2706_s5, %s1402_s30  ;;  %s1889_s24 = scalar_lea.hbm %s2706_s5, 512 }
  0xca   : > { %s1884_s22 = scalar_lea.hbm %s2454_s21, 128  ;;  %p1890_p1 = scmp.lt.u32.totalorder %s2454_s21, %s2706_s5 }
  0xcb   : > { %p1885_p2 = scmp.ne.s32.totalorder %s2454_s21, %s1884_s22  ;;  %p1891_p9 = scmp.lt.u32.totalorder %s1889_s24, %s1884_s22 }
  0xcc   : > { %p1893_p3 = scmp.lt.u32.totalorder %s1884_s22, %s2454_s21 }
  0xcd   : > { %p1887_p6 = pnand %p1886_p12, %p1885_p2  ;;  %p1892_p10 = por %p1891_p9, %p1890_p1 }
  0xcf   : > { %p1888_p8 = pneg %p1887_p6  ;;  %p1894_p13 = por %p1893_p3, %p1892_p10 }
  0xd1   : > { %p1895_p4 = pnand %p1894_p13, %p1888_p8 }
  0xd3   : > { %1898 = shalt.err (!%p1895_p4)
}
  0xd4   : > { %s1899_s18 = scalar_lea.vmem %s2462_s4, 128  ;;  %s2077_s2 = smov [#allocation8]  }
  0xd5   : > { %p1900_p5 = scmp.ne.s32.totalorder %s2462_s4, %s1899_s18  ;;  %s1904_s7 = sshll.u32 %s2077_s2, 4  ;;  %s1905_s7 = int_to_ptr.vmem [resolvable:$false] %s1904_s7 }
  0xd6   : > { %s1906_s20 = scalar_lea.vmem %s1905_s7, 256  ;;  %p1907_p7 = scmp.lt.s32.totalorder %s2462_s4, %s1905_s7 }
  0xd7   : > { %p1902_p2 = pnand %p1900_p5, %p1886_p12  ;;  %p1908_p1 = scmp.lt.s32.totalorder %s1906_s20, %s1899_s18 }
  0xd9   : > { %p1903_p6 = pneg %p1902_p2  ;;  %p1909_p9 = por %p1908_p1, %p1907_p7 }
  0xdb   : > { %p1910_p10 = pnand %p1909_p9, %p1903_p6 }
  0xdd   : > { %1913 = shalt.err (!%p1910_p10)
}
  0xde   : > { %1591 = dma.hbm_to_vmem [thread:$0]  (!%p2458_p11), %s2454_s21, 128, %s2462_s4, %s330_s3  }
  0xdf   : > { %s2709_s22 = sld [smem:[#allocation27_spill]] }
  0xe5   : > { %p2710_p8 = scmp.ne.s32.totalorder %s2709_s22, 0 }
  0xe6   : > { %s2492_s1 = sand.u32 (!%p2710_p8), 1, %s2036_s28  }
  0xe7   : > { %351 = sbr.rel (%p2710_p8) target bundleno = 1650 (0x672), region = 48  ;;  %s1404_s9 = sshll.u32 (!%p2710_p8), %s2492_s1, 3 }
  0xe8   : > { %s354_s24 = scalar_lea.sflag (!%p2710_p8), [#allocation6], %s2492_s1  ;;  %s2496_s8 = scalar_lea.vmem (!%p2710_p8), [#allocation5], %s1404_s9 }
  0xee   : > { %1995 = dma.done.wait (%p2354_p0), %s354_s24, 128  }
  0xef   : > { %1997 = vsyncadd (%p2354_p0), %s354_s24, 4294967168  ;;  %s362_s21 = sand.u32 1, %s2196_s14   ;;  %s364_s4 = sand.u32 1, %s2024_s25  }
  0xf0   : > { %s2504_s17 = sshll.u32 %s364_s4, 3  ;;  %s363_s3 = scalar_lea.sflag [#allocation9], %s362_s21 }
  0xf1   : > { %s366_s30 = scalar_lea.vmem [#allocation8], %s2504_s17  ;;  %p2711_p7 = scmp.ne.s32.totalorder %s2705_s15, 0 }
  0xf3   : > { %1999 = dma.done.wait (%p2711_p7), %s363_s3, 128  }
  0xf4   : > { %2001 = vsyncadd (%p2711_p7), %s363_s3, 4294967168  ;;  %p2712_p11 = scmp.eq.s32.totalorder %s2196_s14, 0 }
  0xf6   : > { %2003 = dma.done.wait (%p2712_p11), [#allocation9], 512   ;;  %p2713_p0 = pmov %p2712_p11 }
  0xf8   : > { %2005 = vsyncadd (%p2713_p0), [#allocation9], 4294966784  ;;  %p2714_p12 = pmov %p2713_p0 }
  0xf9   : > { %p2715_p3 = pmov %p2713_p0 }
  0xfa   : > { %2007 = dma.done.wait (%p2714_p12), [#allocation12], 1024  }
  0xfb   : > { %2009 = vsyncadd (%p2715_p3), [#allocation12], 4294966272  ;;  %p2716_p13 = pmov %p2713_p0 }
  0xfc   : > { %p2717_p4 = pmov %p2713_p0 }
  0xfd   : > { %2011 = dma.done.wait (%p2716_p13), [#allocation15], 512  }
  0xfe   : > { %2013 = vsyncadd (%p2717_p4), [#allocation15], 4294966784  ;;  %s2523_s16 = scalar_lea.vmem [#allocation16], %s1404_s9  ;;  %s2718_s15 = sld [smem:[#allocation24_spill]] }
 0x104   : > { %p1411_p5 = scmp.ne.s32.totalorder %s2718_s15, 0 }
 0x105   : > { %vm422_vm0 = vcmask (!%p1411_p5), 7168   ;;  %vm427_vm1 = vcmask (!%p1411_p5), 130048   ;;  %v2078_v0 = vmov (!%p1411_p5), -1e+30   ;;  %v2079_v1 = vmov (!%p1411_p5), 0.0  }
 0x106   : > { %421 = sbr.rel (%p1411_p5) target bundleno = 269 (0x10d), region = 76  ;;  %423 = vst.msk [vmem:[#allocation2] sm:$0xff] (!%p1411_p5), %vm422_vm0, %v2078_v0  ;;  %424 = vst.msk [vmem:[#allocation2 + $0x8] sm:$0xff] (!%p1411_p5), %vm422_vm0, %v2078_v0 }
 0x107   : > { %425 = vst.msk [vmem:[#allocation3] sm:$0xff] (!%p1411_p5), %vm422_vm0, %v2079_v1  ;;  %426 = vst.msk [vmem:[#allocation3 + $0x8] sm:$0xff] (!%p1411_p5), %vm422_vm0, %v2079_v1 }
 0x108   : > { %428 = vst.msk [vmem:[#allocation4] sm:$0xff] (!%p1411_p5), %vm427_vm1, %v2079_v1  ;;  %429 = vst.msk [vmem:[#allocation4 + $0x8] sm:$0xff] (!%p1411_p5), %vm427_vm1, %v2079_v1 }
 0x10d PF: > { %v511_v2 = vld [vmem:[#allocation11] sm:$0xff]  ;;  %v512_v3 = vld [vmem:[#allocation11 + $0x8] sm:$0xff]  ;;  %v2080_v5 = vmov 0.0|0.0   ;;  %v513_v8 = vld [vmem:[#allocation11 + $0x10] sm:$0xff]  ;;  %vm2081_vm2 = vmmov 0   ;;  %v2082_v13 = vmov 0.0  }
 0x10e   : > { %v432_v4 = vld [vmem:[#allocation10] sm:$0xff]  ;;  %1532 = vmatprep.subr.bf16.mxu1 %v2080_v5  ;;  %1526 = vmatprep.subr.bf16.mxu0 %v2080_v5  ;;  %v1533_v6 = vpack.c.bf16 %v512_v3, %v511_v2  ;;  %v433_v7 = vld [vmem:[#allocation10 + $0x8] sm:$0xff]  ;;  %v514_v9 = vld [vmem:[#allocation11 + $0x18] sm:$0xff]  ;;  %vm436_vm3 = vcmask 261120   ;;  %vm662_vm4 = vcmask 130048   ;;  %s2083_s14 = smov 112  }
 0x10f   : > { %v1527_v10 = vpack.c.bf16 %v433_v7, %v432_v4  ;;  %v434_v11 = vld [vmem:[#allocation10 + $0x10] sm:$0xff]  ;;  %v435_v12 = vld [vmem:[#allocation10 + $0x18] sm:$0xff]  ;;  %1478 = vmatprep.mubr.msk.f32.mxu1 %vm2081_vm2, %v2082_v13  ;;  %1467 = vmatprep.mubr.msk.f32.mxu0 %vm2081_vm2, %v2082_v13  ;;  %v1536_v14 = vpack.c.bf16 %v514_v9, %v513_v8  ;;  %v430_v17 = vld [vmem:[%s2496_s8] sm:$0xff]  ;;  %vm740_vm5 = vcmask 64512   ;;  %v2084_v36 = vmov 0   ;;  %s2719_s18 = sld [smem:[#allocation24_spill]] }
 0x110   : > { %1534 = vmatpush3.bf16.msra.mxu1 %v1533_v6  ;;  %v1530_v15 = vpack.c.bf16 %v435_v12, %v434_v11  ;;  %v431_v16 = vld [vmem:[%s366_s30] sm:$0xff]  ;;  %v588_v18 = vld [vmem:[#allocation13] sm:$0xff]  ;;  %v589_v19 = vld [vmem:[#allocation13 + $0x8] sm:$0xff]  ;;  %1727 = vset.pattern.permute.xlu0 %v2084_v36  ;;  %vm762_vm6 = vcmask 7168  }
 0x111   : > { %1528 = vmatpush3.bf16.msra.mxu0 %v1527_v10  ;;  %1535 = vmatprep.subr.bf16.mxu1 %v2080_v5  ;;  %v590_v20 = vld [vmem:[#allocation13 + $0x10] sm:$0xff]  ;;  %v1539_v21 = vpack.c.bf16 %v589_v19, %v588_v18  ;;  %v591_v22 = vld [vmem:[#allocation13 + $0x18] sm:$0xff]  ;;  %v756_v63 = vld [vmem:[#allocation3] sm:$0xff] }
 0x112   : > { %1529 = vmatprep.subr.bf16.mxu0 %v2080_v5  ;;  %v1542_v23 = vpack.c.bf16 %v591_v22, %v590_v20  ;;  %1728 = vset.pattern.permute.xlu1 %v2084_v36  ;;  %v739_v40 = vld [vmem:[#allocation2] sm:$0xff]  ;;  %v926_v45 = vld [vmem:[#allocation2 + $0x8] sm:$0xff]  ;;  %v943_v9 = vld [vmem:[#allocation3 + $0x8] sm:$0xff] }
 0x113   : > { %v764_v3 = vld [vmem:[#allocation4] sm:$0xff] }
 0x114   : > { %1537 = vmatpush3.bf16.msra.mxu1 %v1536_v14 }
 0x115   : > { %1531 = vmatpush3.bf16.msra.mxu0 %v1530_v15  ;;  %1492 = vmatprep.subr.mxu1 %v2082_v13  ;;  %p1421_p2 = scmp.ne.s32.totalorder %s2719_s18, 1 }
 0x116   : > { %1538 = vmatprep.subr.bf16.mxu0 %v2080_v5  ;;  %v2086_v22 = vmov (!%p1421_p2), 0.0|0.0   ;;  %vm2087_vm7 = vmmov (!%p1421_p2), 0   ;;  %s2720_s20 = sld [smem:[#allocation37_spill]] (!%p1421_p2) }
 0x117   : > { %1479 = vmatmul.mubr.msk.f32.vlgmr.msra.gmra.mrb[0].mxu1 %vm436_vm3, %v431_v16 }
 0x118   : > { %1468 = vmatmul.mubr.msk.f32.vlgmr.msra.gmra.mrb[0].mxu0 %vm436_vm3, %v430_v17  ;;  %1494 = vmatprep.mubr.msk.f32.mxu1 %vm2081_vm2, %v2082_v13 }
 0x119   : > { %1489 = vmatprep.mubr.msk.f32.mxu0 %vm2081_vm2, %v2082_v13  ;;  %1540 = vmatpush3.bf16.msra.mxu0 %v1539_v21  ;;  %v2085_v21 = vmov (!%p1421_p2), 0  }
 0x11a   : > { %1541 = vmatprep.subr.bf16.mxu0 %v2080_v5 }
 0x11d   : > { %1543 = vmatpush3.bf16.msra.mxu0 %v1542_v23  ;;  %v1042_v23 = vld [vmem:[#allocation14] sm:$0xff] (!%p1421_p2) }
 0x11e   : > { %1502 = vmatprep.subr.mxu0 %v2082_v13 }
 0x120   : > { %1490 = vmatmul.mubr.msk.f32.vlgmr.msra.gmra.mrb[2].mxu0 %vm436_vm3, %v431_v16 }
 0x121   : > { %1504 = vmatprep.mubr.msk.f32.mxu0 %vm2081_vm2, %v2082_v13 }
 0x1ea   : > { %v584_v24 = vpop.f32.mrb[0].mxu1 }
 0x1eb   : > { %849 = vrot.lane.b32.xlu0 %v584_v24, %s2083_s14  ;;  %v506_v25 = vpop.f32.mrb[0].mxu0  ;;  %v1480_v26 = vpop.f32.mrb[1].mxu1  ;;  %1493 = vmatpush3.xpose.msk.msra.mxu1 %vm662_vm4, %v584_v24  ;;  %v1043_v24 = vld [vmem:[#allocation14 + $0x8] sm:$0xff] (!%p1421_p2) }
 0x1ec   : > { %v510_v27 = vmul.f32 0.25, %v506_v25  ;;  %v1469_v28 = vpop.f32.mrb[1].mxu0  ;;  %1497 = vmatprep.subr.mxu1 %v2082_v13  ;;  %v1548_v25 = vpack.c.bf16 (!%p1421_p2), %v1043_v24, %v1042_v23 }
 0x1ed   : > { %v1045_v28 = vld [vmem:[#allocation14 + $0x18] sm:$0xff] (!%p1421_p2) }
 0x1ee   : > { %1495 = vmatmul.mubr.msk.f32.vlgmr.msra.gmra.mrb[2].mxu1 %vm662_vm4, %v510_v27 }
 0x1ef   : > { %847 = vrot.lane.b32.xlu0 %v510_v27, %s2083_s14  ;;  %1499 = vmatprep.mubr.msk.f32.mxu1 %vm2081_vm2, %v2082_v13  ;;  %v1044_v27 = vld [vmem:[#allocation14 + $0x10] sm:$0xff] (!%p1421_p2) }
 0x1f3   : > { %v658_v29 = vpop.f32.mrb[2].mxu0 }
 0x1f4   : > { %v1491_v30 = vpop.f32.mrb[3].mxu0  ;;  %1498 = vmatpush3.msra.mxu1 %v658_v29 }
 0x1f5   : > { %1507 = vmatprep.subr.mxu1 %v2082_v13  ;;  %v2088_v30 = vmov (!%p1421_p2), 0.0  }
 0x25d   : > { %v850_v31 = vpop.permute.xlu0 %849 }
 0x25e   : > { %1503 = vmatpush3.xpose.msk.msra.mxu0 %vm662_vm4, %v850_v31  ;;  %v1545_v31 = vpack.c.bf16 (!%p1421_p2), %v1045_v28, %v1044_v27 }
 0x25f   : > { %1544 = vmatprep.subr.bf16.mxu0 (!%p1421_p2), %v2086_v22 }
 0x261   : > { %v848_v32 = vpop.permute.xlu0 %847 }
 0x262   : > { %1505 = vmatmul.mubr.msk.f32.vlgmr.msra.gmra.mrb[4].mxu0 %vm662_vm4, %v848_v32 }
 0x263   : > { %1516 = vmatprep.mubr.msk.f32.mxu0 (!%p1421_p2), %vm2087_vm7, %v2088_v30  ;;  %1546 = vmatpush3.bf16.msra.mxu0 (!%p1421_p2), %v1545_v31 }
 0x2c1   : > { %v735_v33 = vpop.f32.mrb[2].mxu1 }
 0x2c2   : > { %v1496_v34 = vpop.f32.mrb[3].mxu1  ;;  %v741_v35 = vsel %vm740_vm5, %v735_v33, -inf }
 0x2c3   : > { %742 = vmax.xlane.f32.xlu1 %v741_v35 }
 0x335   : > { %v921_v37 = vpop.f32.mrb[4].mxu0 }
 0x336   : > { %v1506_v38 = vpop.f32.mrb[5].mxu0  ;;  %v927_v39 = vsel %vm740_vm5, %v921_v37, -inf }
 0x337   : > { %928 = vmax.xlane.f32.xlu1 %v927_v39 }
 0x350   : > { %v743_v41 = vpop.xlane.xlu1 %742 }
 0x351   : > { %v744_v42 = vmax.f32 %v739_v40, %v743_v41  ;;  %v1424_v41 = vld [vmem:[%s2720_s20] ss:$0 sm:$0xff] (!%p1421_p2) }
 0x353   : > { %v745_v43 = vsub.f32 %v739_v40, %v744_v42  ;;  %846 = vst.msk [vmem:[#allocation2] sm:$0xff] %vm762_vm6, %v744_v42  ;;  %750 = vperm.xlu0 %1727, %v744_v42  }
 0x355   : > { %v746_v44 = vmul.f32 1.442695, %v745_v43 }
 0x357   : > { %959 = vrot.lane.b32.xlu0 %v658_v29, %s2083_s14  ;;  %1729 = vpow2.f32 %v746_v44 }
 0x361   : > { %v1730_v48 = vpop.eup %1729 }
 0x362   : > { %v757_v0 = vmul.f32 %v1730_v48, %v756_v63 }
 0x3c4   : > { %v929_v46 = vpop.xlane.xlu1 %928 }
 0x3c5   : > { %v930_v47 = vmax.f32 %v926_v45, %v929_v46 }
 0x3c7   : > { %1037 = vst.msk [vmem:[#allocation2 + $0x8] sm:$0xff] %vm762_vm6, %v930_v47  ;;  %936 = vperm.xlu1 %1728, %v930_v47   ;;  %v931_v55 = vsub.f32 %v926_v45, %v930_v47 }
 0x3c9   : > { %v932_v56 = vmul.f32 1.442695, %v931_v55 }
 0x3cb   : > { %767 = vperm.xlu1 %1728, %v1730_v48  }
 0x3d2   : > { %v751_v49 = vpop.permute.xlu0 %750 }
 0x3d3   : > { %v753_v50 = vsub.f32 %v735_v33, %v751_v49 }
 0x3d5   : > { %v754_v51 = vmul.f32 1.442695, %v753_v50 }
 0x3d6   : > { %v960_v53 = vpop.permute.xlu0 %959 }
 0x3d7   : > { %1731 = vpow2.f32 %v754_v51 }
 0x3d8   : > { %1733 = vpow2.f32 %v932_v56 }
 0x3e1   : > { %v1732_v52 = vpop.eup %1731 }
 0x3e2   : > { %1500 = vmatmul.mubr.msk.f32.vlgmr.msra.gmra.mrb[4].mxu1 %vm740_vm5, %v1732_v52  ;;  %v758_v54 = vsel %vm740_vm5, %v1732_v52, 0.0  ;;  %v1734_v57 = vpop.eup %1733 }
 0x3e3   : > { %1508 = vmatpush3.msra.mxu1 %v960_v53  ;;  %759 = vadd.xlane.f32.xlu0 %v758_v54  ;;  %v944_v10 = vmul.f32 %v1734_v57, %v943_v9 }
 0x3e4   : > { %1509 = vmatprep.mubr.msk.f32.mxu1 %vm2081_vm2, %v2082_v13  ;;  %v951_v13 = vld [vmem:[#allocation4 + $0x8] sm:$0xff]  ;;  %1547 = vmatprep.subr.bf16.mxu1 (!%p1421_p2), %v2086_v22 }
 0x3f9   : > { %954 = vperm.xlu0 %1727, %v1734_v57  }
 0x3fd   : > { %1737 = vset.pattern.permute.xlu0 (!%p1421_p2), %v2085_v21 }
 0x446   : > { %v937_v58 = vpop.permute.xlu1 %936 }
 0x447   : > { %v939_v59 = vsub.f32 %v921_v37, %v937_v58 }
 0x449   : > { %v940_v60 = vmul.f32 1.442695, %v939_v59 }
 0x44a   : > { %v768_v4 = vpop.permute.xlu1 %767 }
 0x44b   : > { %1735 = vpow2.f32 %v940_v60  ;;  %v770_v5 = vmul.f32 %v768_v4, %v764_v3 }
 0x455   : > { %v1736_v61 = vpop.eup %1735 }
 0x456   : > { %1510 = vmatmul.mubr.msk.f32.vlgmr.msra.gmra.mrb[6].mxu1 %vm740_vm5, %v1736_v61  ;;  %v945_v62 = vsel %vm740_vm5, %v1736_v61, 0.0 }
 0x457   : > { %946 = vadd.xlane.f32.xlu1 %v945_v62  ;;  %1549 = vmatpush3.bf16.msra.mxu1 (!%p1421_p2), %v1548_v25 }
 0x458   : > { %1523 = vmatprep.mubr.msk.f32.mxu1 (!%p1421_p2), %vm2087_vm7, %v2088_v30 }
 0x470   : > { %v760_v1 = vpop.xlane.xlu0 %759 }
 0x471   : > { %v761_v2 = vadd.f32 %v760_v1, %v757_v0 }
 0x473   : > { %763 = vst.msk [vmem:[#allocation3] sm:$0xff] %vm762_vm6, %v761_v2 }
 0x478   : > { %v955_v14 = vpop.permute.xlu0 %954 }
 0x479   : > { %v957_v15 = vmul.f32 %v955_v14, %v951_v13 }
 0x47a   : > { %v1046_v19 = vld [vmem:[#allocation3] sm:$0xff] (!%p1421_p2) }
 0x47b   : > { %1738 = vrcp.f32 (!%p1421_p2), %v1046_v19 }
 0x485   : > { %v1739_v26 = vpop.eup (!%p1421_p2), %1738 }
 0x486   : > { %1051 = vperm.xlu0 (!%p1421_p2), %1737, %v1739_v26  }
 0x4b5   : > { %v840_v6 = vpop.f32.mrb[4].mxu1 }
 0x4b6   : > { %v844_v7 = vadd.f32 %v840_v6, %v770_v5  ;;  %v1501_v8 = vpop.f32.mrb[5].mxu1 }
 0x4b8   : > { %845 = vst.msk [vmem:[#allocation4] sm:$0xff] %vm662_vm4, %v844_v7 }
 0x4bf   : > { %v1048_v32 = vld [vmem:[#allocation4] sm:$0xff] (!%p1421_p2) }
 0x4e4   : > { %v947_v11 = vpop.xlane.xlu1 %946 }
 0x4e5   : > { %v948_v12 = vadd.f32 %v947_v11, %v944_v10 }
 0x4e7   : > { %949 = vst.msk [vmem:[#allocation3 + $0x8] sm:$0xff] %vm762_vm6, %v948_v12 }
 0x4ee   : > { %v1055_v20 = vld [vmem:[#allocation3 + $0x8] sm:$0xff] (!%p1421_p2) }
 0x4ef   : > { %1740 = vrcp.f32 (!%p1421_p2), %v1055_v20 }
 0x4f9   : > { %v1741_v29 = vpop.eup (!%p1421_p2), %1740 }
 0x4fa   : > { %1060 = vperm.xlu0 (!%p1421_p2), %1737, %v1741_v29  }
 0x505   : > { %v1052_v33 = vpop.permute.xlu0 (!%p1421_p2), %1051 }
 0x506   : > { %v1054_v34 = vmul.f32 (!%p1421_p2), %v1052_v33, %v1048_v32 }
 0x508   : > { %1524 = vmatmul.mubr.msk.f32.vlgmr.msra.gmra.mrb[0].mxu1 (!%p1421_p2), %vm662_vm4, %v1054_v34 }
 0x526   : > { %1041 = sbr.rel (%p1421_p2) target bundleno = 1621 (0x655), region = 80 }
 0x529   : > { %v1031_v16 = vpop.f32.mrb[6].mxu1 }
 0x52a   : > { %v1035_v17 = vadd.f32 %v1031_v16, %v957_v15  ;;  %v1511_v18 = vpop.f32.mrb[7].mxu1 }
 0x52c   : > { %1036 = vst.msk [vmem:[#allocation4 + $0x8] sm:$0xff] %vm662_vm4, %v1035_v17 }
 0x533   : > { %v1057_v35 = vld [vmem:[#allocation4 + $0x8] sm:$0xff] }
 0x579   : > { %v1061_v36 = vpop.permute.xlu0 %1060 }
 0x57a   : > { %v1063_v37 = vmul.f32 %v1061_v36, %v1057_v35 }
 0x57c   : > { %1517 = vmatmul.mubr.msk.f32.vlgmr.msra.gmra.mrb[0].mxu0 %vm662_vm4, %v1063_v37 }
 0x5db   : > { %v1206_v38 = vpop.f32.mrb[0].mxu1 }
 0x5dc   : > { %v1525_v39 = vpop.f32.mrb[1].mxu1 }
 0x64f   : > { %v1133_v40 = vpop.f32.mrb[0].mxu0 }
 0x650   : > { %v1207_v42 = vadd.f32 %v1206_v38, %v1133_v40  ;;  %v1518_v43 = vpop.f32.mrb[1].mxu0 }
 0x652   : > { %v1217_v44 = vadd.f32 %v1424_v41, %v1207_v42 }
 0x654   : > { %1218 = vst.msk [vmem:[%s2523_s16] sm:$0xff] %vm436_vm3, %v1217_v44 }
 0x655 PF: > { %s2721_s22 = sld [smem:[#allocation26_spill]]  ;;  %s2722_s9 = sld [smem:[#allocation25_spill]] }
 0x656   : > { %s1235_s21 = sshll.u32 %s2523_s16, 4  ;;  %s2723_s30 = sld [smem:[#allocation38_spill]]  ;;  %s2580_s21 = int_to_ptr.vmem [resolvable:$true] %s1235_s21 }
 0x657   : > { %s1220_s18 = scalar_lea.sflag [#allocation7], %s2492_s1  ;;  %s1914_s2 = scalar_lea.vmem %s2580_s21, 128 }
 0x658   : > { %p1915_p6 = scmp.ne.s32.totalorder %s2580_s21, %s1914_s2  ;;  %p2725_p1 = scmp.ne.s32.totalorder %s2697_s19, 0 }
 0x659   : > { %s2089_s7 = smov [#allocation16]  }
 0x65a   : > { %p1916_p9 = pnand %p1915_p6, %p2725_p1  ;;  %s1918_s20 = sshll.u32 %s2089_s7, 4  ;;  %s1919_s20 = int_to_ptr.vmem [resolvable:$false] %s1918_s20 }
 0x65b   : > { %s1426_s24 = sshll.u32 %s2721_s22, 1  ;;  %s1920_s16 = scalar_lea.vmem %s1919_s20, 256 }
 0x65c   : > { %s1231_s8 = sadd.s32 %s2722_s9, %s1426_s24  ;;  %s2724_s15 = smov %s2723_s30 }
 0x65d   : > { %s1427_s4 = sshll.u32 %s1231_s8, 7  ;;  %p1917_p10 = pneg %p1916_p9 }
 0x65e   : > { %s1233_s14 = scalar_lea.hbm %s2723_s30, %s1427_s4  ;;  %p1921_p8 = scmp.lt.s32.totalorder %s2580_s21, %s1919_s20 }
 0x65f   : > { %p1922_p7 = scmp.lt.s32.totalorder %s1920_s16, %s1914_s2 }
 0x661   : > { %p1923_p11 = por %p1922_p7, %p1921_p8 }
 0x663   : > { %p1924_p0 = pnand %p1923_p11, %p1917_p10 }
 0x665   : > { %1927 = shalt.err (!%p1924_p0)
}
 0x666   : > { %s1928_s22 = scalar_lea.hbm %s1233_s14, 128  ;;  %s1932_s24 = scalar_lea.hbm %s2724_s15, 512 }
 0x667   : > { %p1929_p12 = scmp.ne.s32.totalorder %s1233_s14, %s1928_s22  ;;  %p1933_p4 = scmp.lt.u32.totalorder %s1233_s14, %s2724_s15 }
 0x668   : > { %p1934_p5 = scmp.lt.u32.totalorder %s1932_s24, %s1928_s22  ;;  %p1936_p6 = scmp.lt.u32.totalorder %s1928_s22, %s1233_s14 }
 0x669   : > { %p1930_p3 = pnand %p1929_p12, %p2725_p1 }
 0x66a   : > { %p1935_p2 = por %p1934_p5, %p1933_p4 }
 0x66b   : > { %p1931_p13 = pneg %p1930_p3 }
 0x66c   : > { %p1937_p9 = por %p1936_p6, %p1935_p2 }
 0x66e   : > { %p1938_p10 = pnand %p1937_p9, %p1931_p13 }
 0x670   : > { %1941 = shalt.err (!%p1938_p10)
}
 0x671   : > { %1570 = dma.vmem_to_hbm [thread:$0]  (%p2725_p1), %s2580_s21, 128, %s1233_s14, %s1220_s18  }
 0x672 PF: > { %s2726_s17 = sld [smem:[#allocation31_spill]]  ;;  %p1605_p8 = scmp.ge.s32.totalorder %s2068_s13, 2 }
 0x673   : > { %s1247_s3 = sand.u32 1, %s2032_s27  }
 0x674   : > { %s1248_s30 = scalar_lea.sflag [#allocation7], %s1247_s3 }
 0x678   : > { %p2727_p7 = scmp.ne.s32.totalorder %s2726_s17, 0 }
 0x67a   : > { %p1593_p11 = pnand %p1605_p8, %p2727_p7 }
 0x67c   : > { %2015 = dma.done.wait (!%p1593_p11), %s1248_s30, 128  }
 0x67d   : > { %2017 = vsyncadd (!%p1593_p11), %s1248_s30, 4294967168  ;;  %s28_s13 = sadd.s32 1, %s2068_s13   ;;  %s2729_s19 = sld [smem:[#allocation28_spill]] }
 0x67e   : > { %p2607_p0 = scmp.ge.s32.totalorder %s28_s13, 10   ;;  %s2730_s21 = sld [smem:[#allocation29_spill]] }
 0x67f   : > { %s2731_s14 = sld [smem:[#allocation30_spill]]  ;;  %s2732_s24 = smov %s2024_s25 }
 0x680   : > { %s2733_s25 = smov %s2028_s26  ;;  %s2734_s26 = smov %s2436_s23 }
 0x681   : > { %s2735_s27 = smov %s2036_s28  ;;  %s2736_s28 = smov %s2040_s29 }
 0x682   : > { %s2737_s29 = smov %s2383_s6  ;;  %s2738_s30 = smov %s2056_s10 }
 0x683   : > { %s2739_s8 = smov %s2060_s11  ;;  %s2740_s9 = smov %s2064_s12 }
 0x684   : > { %s2741_s10 = smov %s2729_s19  ;;  %s2742_s11 = smov %s2730_s21 }
 0x685   : > { %s2743_s12 = smov %s2731_s14  ;;  %27 = sbr.rel (!%p2607_p0) target bundleno = 22 (0x16), region = 133 }
 0x68c   :  { %1253 = vsyncpa [#allocation6], 1 }
 0x68d   :  { %1255 = vsyncpa [#allocation6 + $0x1], 1 }
 0x68e   :  { %1256 = vsyncpa [#allocation9], 1 }
 0x68f   :  { %1258 = vsyncpa [#allocation9 + $0x1], 1 }
 0x690   :  { %1259 = vsyncpa [#allocation12], 1 }
 0x691   :  { %1260 = vsyncpa [#allocation15], 1 }
 0x692   :  { %1261 = vsyncpa [#allocation7], 1 }
 0x693   :  { %1263 = vsyncpa [#allocation7 + $0x1], 1 }

</bundles_post_ra>
